<compile_context>
chip_gen: v5e
topology: v5e:2x2
jax: 0.10.0
libtpu: 0.0.40
codegen_flags: <defaults>
</compile_context>

<pallas_src>
import functools

import jax
import jax.numpy as jnp
from jax.experimental import pallas as pl
from jax.experimental.pallas import tpu as pltpu


def _poisson_kernel(samples_ref, label_ref, predict_ref, w_ref, b_ref,
                    out_ref, pad_ref):
    """One grid step = block_b batch elements (R = block_b * L rows).

    samples_ref: [R, 3H] bf16        label_ref: [Bt, L, N] f32
    predict_ref: [R, N] f32          w_ref: [3H, H] bf16     b_ref: [1, H] f32
    out_ref:     [R, Np] f32 (Np = N padded to a lane multiple; pad cols stay 0)
    pad_ref:     [R, Np] f32 VMEM scratch used to lane-pad N-wide values.
    """
    Bt, L, N = label_ref.shape
    R = samples_ref.shape[0]

    # ---- self.pro_ject(samples): one fused [R,3H] @ [3H,H] bf16 MXU matmul ------
    s = jax.lax.dot_general(samples_ref[...], w_ref[...],
                            (((1,), (0,)), ((), ())),
                            preferred_element_type=jnp.float32)
    s = (s + b_ref[...]).astype(jnp.bfloat16)                         # [R, H]

    # ---- block-diagonal Graph + masked softmax over the whole batch block ------
    # G_all = S_all @ S_all^T (contract last dims -> no transpose).  Entries that
    # pair rows of different batch elements are forced to -1e30: exp underflows to
    # exactly 0, so one [R,R] softmax == the per-element [L,L] softmaxes while the
    # MXU tile stays full.
    graph = jax.lax.dot_general(s, s, (((1,), (1,)), ((), ())),
                                preferred_element_type=jnp.float32)   # [R, R] f32
    row = jax.lax.broadcasted_iota(jnp.int32, (R, R), 0)
    col = jax.lax.broadcasted_iota(jnp.int32, (R, R), 1)
    g = jnp.where(row == col, graph - 100000.0, graph)                # kill diagonal
    if Bt > 1:
        # Block membership without integer division (exact for these sizes).
        rblk = jnp.floor(row.astype(jnp.float32) / jnp.float32(L))
        cblk = jnp.floor(col.astype(jnp.float32) / jnp.float32(L))
        g = jnp.where(rblk == cblk, g, jnp.float32(-1e30))
    g = g - jnp.max(g, axis=-1, keepdims=True)
    eg = jnp.exp(g)
    # Exact softmax denominator: cheap, and avoids compounding approx-recip error
    # through the 5-step propagation chain.
    edge = (eg / jnp.sum(eg, axis=-1, keepdims=True)).astype(jnp.bfloat16)

    # ---- Label_origin = (predict_sup - predict_sup_avg) * Mask  (per element) ---
    sup = label_ref[...]                                              # [Bt, L, N]
    has = (jnp.sum(sup, axis=-1, keepdims=True) > 0.5).astype(jnp.float32)
    # Clamp guards the degenerate "no labeled row" case (PyTorch would NaN there).
    total = jnp.maximum(jnp.sum(has, axis=1, keepdims=True), 1.0)     # [Bt, 1, 1]
    avg = jnp.sum(sup, axis=1, keepdims=True) / total                 # [Bt, 1, N]
    label_origin = ((sup - avg) * has).reshape(R, N)                  # [R, N]

    # ---- lane-pad predict / label_origin to Np with exact zeros (VMEM scratch) --
    # Padded columns of db/predict are 0 and provably stay 0 through every
    # propagation step, so slicing them off in the wrapper is exact.
    pad_ref[...] = jnp.zeros_like(pad_ref)
    pad_ref[:, :N] = predict_ref[...]
    pred_p = pad_ref[...]                                             # [R, Np] f32
    pad_ref[:, :N] = label_origin
    db = pad_ref[...]                                                 # [R, Np] f32

    # ---- label_forward -----------------------------------------------------------
    # Softmax rows sum to 1, so D = diag(1/(1+1e-10)) == identity in f32 -> dropped.
    # P @ ut == edge^T @ ut, expressed as a dot_general contracting dim 0 of both
    # operands (edge is block-diagonal, so this equals the per-element products).
    ut = db                                    # t = 1:  P @ 0 + Db
    for t in range(2, 7):                      # T = 6 iterations total
        pu = jax.lax.dot_general(edge, ut.astype(jnp.bfloat16),
                                 (((0,), (0,)), ((), ())),
                                 preferred_element_type=jnp.float32)  # edge^T @ ut
        ut = pu + db
        if t == 3:                             # (t == 7 is unreachable for T = 6)
            ut = ut + pred_p
            # dropout(attention_probs_dropout_prob) -> identity in eval mode.
            # TODO(synk): training-mode stochastic dropout not implemented in-kernel.

    # forward() returns `label` (== ut); the trailing softmax(label/0.1) is unused.
    out_ref[...] = ut.astype(out_ref.dtype)


def _tpu_vmem_limit():
    """Generation-aware VMEM budget (v7x: 64 MiB/TC, v5e/v6e: 128 MiB)."""
    try:
        phys = int(pltpu.get_tpu_info().vmem_capacity_bytes)
    except Exception:
        phys = 64 * 1024 * 1024                 # conservative (v7x-sized) fallback
    return min(phys * 3 // 4, 100 * 1024 * 1024)


def _vmem_estimate(bt, L, D3, N, Np, H):
    """Rough per-grid-step VMEM footprint: double-buffered blocks + [R,R]
    graph/edge temporaries + lane-pad scratch."""
    R = bt * L
    io = 2 * (R * D3 * 2            # samples bf16 (double-buffered)
              + bt * L * N * 4      # label f32
              + R * N * 4           # predict f32
              + R * Np * 4          # output f32
              + D3 * H * 2 + H * 4)  # weight bf16 + bias f32
    temps = (R * H * 4              # projected samples (f32 + bf16 copies)
             + 5 * R * R * 4        # graph / masked / exp / softmax temporaries
             + R * R * 2            # edge bf16
             + 6 * R * Np * 4       # db, pred_p, ut, pu, ...
             + R * Np * 4)          # lane-pad scratch
    return io + temps


def _pick_block_b(b, L, D3, N, Np, H, budget, row_target=256):
    """Largest batch block whose Bt*L row count keeps the block-diagonal matmuls
    near one MXU tile (256 on v6e/v7x; two 128-wide passes on v5e), respects the
    BlockSpec sublane rule on the 2-D row blocks, and fits the VMEM budget."""
    aligned = [c for c in range(1, b + 1)
               if b % c == 0 and ((c * L) % 8 == 0 or c == b)]
    good = [c for c in aligned
            if c * L <= max(row_target, L)
            and _vmem_estimate(c, L, D3, N, Np, H) <= budget]
    if good:
        return max(good)
    return min(aligned)


@functools.partial(jax.jit, static_argnames=("block_b", "n_padded", "vmem_limit"))
def _poisson_call(samples2d, label3d, predict2d, w, bias2, *,
                  block_b, n_padded, vmem_limit):
    b, L, N = label3d.shape
    D3, H = w.shape
    Np = n_padded
    rows = block_b * L
    return pl.pallas_call(
        _poisson_kernel,
        out_shape=jax.ShapeDtypeStruct((b * L, Np), jnp.float32),
        grid_spec=pltpu.PrefetchScalarGridSpec(
            num_scalar_prefetch=0,
            grid=(b // block_b,),
            in_specs=[
                pl.BlockSpec((rows, D3), lambda i: (i, 0)),
                pl.BlockSpec((block_b, L, N), lambda i: (i, 0, 0)),
                pl.BlockSpec((rows, N), lambda i: (i, 0)),
                pl.BlockSpec((D3, H), lambda i: (0, 0)),
                pl.BlockSpec((1, H), lambda i: (0, 0)),
            ],
            out_specs=pl.BlockSpec((rows, Np), lambda i: (i, 0)),
            scratch_shapes=[pltpu.VMEM((rows, Np), jnp.float32)],
        ),
        compiler_params=pltpu.CompilerParams(
            # TODO(synk): on v7x, switch this axis to CORE_PARALLEL / core_map so
            # both TensorCores get a share of the batch grid.
            dimension_semantics=("parallel",),
            vmem_limit_bytes=vmem_limit,
        ),
    )(samples2d, label3d, predict2d, w, bias2)


def poisson_learning(samples, label_one_hot, predict, W, bias, block_b=None):
    """Forward pass of Poisson_learning (eval mode).

    samples: [b, L, 3H]; label_one_hot / predict: [b, L, N]
    W: [3H, H] (transpose of torch's Linear weight); bias: [H]
    Returns `label` (== ut) of shape [b, L, N] f32.
    """
    b, L, D3 = samples.shape
    N = label_one_hot.shape[-1]
    H = W.shape[1]
    # Lane-dense class axis for the OUTPUT only; inputs travel at width N.
    Np = ((N + 127) // 128) * 128

    vmem_limit = _tpu_vmem_limit()
    if block_b is None:
        block_b = _pick_block_b(b, L, D3, N, Np, H, budget=int(vmem_limit * 0.85))
    assert b % block_b == 0, "block_b must divide the batch size"
    assert (block_b * L) % 8 == 0 or block_b == b, "row block must satisfy sublane rule"
    # TODO(synk): very large L (R*R temporaries past the VMEM budget) would need an
    # L-tiled / online-softmax variant of the Graph + propagation.
    # TODO(synk): L not a multiple of 8 makes the in-kernel (Bt,L,N)->(R,N) reshape a
    # relayout copy; padding L would additionally require masking padded Graph columns.

    out2d = _poisson_call(
        samples.reshape(b * L, D3).astype(jnp.bfloat16),   # halve samples HBM traffic
        label_one_hot.astype(jnp.float32),
        predict.reshape(b * L, N).astype(jnp.float32),
        W.astype(jnp.bfloat16),
        bias.reshape(1, H).astype(jnp.float32),
        block_b=block_b, n_padded=Np, vmem_limit=vmem_limit)
    return out2d.reshape(b, L, Np)[..., :N]


def _reference(samples, label_one_hot, predict, W, bias):
    """Pure-JAX f32 reference mirroring the PyTorch forward (eval mode)."""
    s = samples @ W + bias[None, None, :]
    graph = jnp.einsum("blh,bmh->blm", s, s)
    b, L, _ = graph.shape
    eye = jnp.eye(L, dtype=graph.dtype)[None]
    g = graph + eye * (-100000.0)
    edge = jax.nn.softmax(g, axis=-1)

    sup = label_one_hot
    has = (jnp.sum(sup, -1) > 0.5).astype(jnp.float32)             # [b, L]
    total = jnp.sum(has, -1)[:, None]                              # [b, 1]
    avg = (jnp.sum(sup, -2) / total)[:, None, :]                   # [b, 1, N]
    B = (sup - avg) * has[..., None]

    d = 1.0 / jnp.sum(edge + 1e-10 * eye, -1)                      # [b, L]
    P = d[..., None] * jnp.swapaxes(edge, -1, -2)
    Db = d[..., None] * B
    ut = jnp.zeros_like(B)
    for t in range(1, 7):
        ut = jnp.einsum("blm,bmn->bln", P, ut) + Db
        if t == 3:
            ut = ut + predict
    return ut


if __name__ == "__main__":
    key = jax.random.PRNGKey(0)
    b, L, H, N = 4, 8, 32, 16
    D3 = 3 * H

    k1, k2, k3, k4, k5 = jax.random.split(key, 5)
    samples = jax.random.normal(k1, (b, L, D3), dtype=jnp.float32) * 0.1
    # one-hot labels (every row labeled -> Total = L, as the module expects)
    label_idx = jax.random.randint(k2, (b, L), 0, N)
    label_one_hot = jax.nn.one_hot(label_idx, N, dtype=jnp.float32)
    predict = jax.random.normal(k3, (b, L, N), dtype=jnp.float32) * 0.1

    # deterministic "Linear(hidden*3, hidden)" parameters, stored as [3H, H]
    W = jax.random.normal(k4, (D3, H), dtype=jnp.float32) * (1.0 / jnp.sqrt(D3))
    bias = jax.random.normal(k5, (H,), dtype=jnp.float32) * 0.01

    out = poisson_learning(samples, label_one_hot, predict, W, bias)
    out = jax.block_until_ready(out)

    ref = _reference(samples, label_one_hot, predict, W, bias)
    assert out.shape == (b, L, N)
    # bf16 MXU operands (projection, Graph, and the 5-step propagation chain)
    # against a pure-f32 reference -> loosened tolerance.
    assert jnp.allclose(out, ref, atol=5e-2, rtol=5e-2), "mismatch vs reference"

    print("KERNEL_OK")
</pallas_src>

<mosaic_0001>
module attributes {stable_mosaic.version = 11 : i64} {
  func.func @_poisson_kernel(%arg0: i32, %arg1: memref<32x96xbf16, #tpu.memory_space<vmem>>, %arg2: memref<4x8x16xf32, #tpu.memory_space<vmem>>, %arg3: memref<32x16xf32, #tpu.memory_space<vmem>>, %arg4: memref<96x32xbf16, #tpu.memory_space<vmem>>, %arg5: memref<1x32xf32, #tpu.memory_space<vmem>>, %arg6: memref<32x128xf32, #tpu.memory_space<vmem>>, %arg7: memref<32x128xf32, #tpu.memory_space<vmem>>) attributes {dimension_semantics = [#tpu.dimension_semantics<parallel>], iteration_bounds = array<i64: 1>, scalar_prefetch = 0 : i64, scratch_operands = 1 : i64, tpu.core_type = #tpu.core_type<tc>, window_params = [{transform_indices = @transform_0, window_bounds = array<i64: 32, 96>}, {transform_indices = @transform_1, window_bounds = array<i64: 4, 8, 16>}, {transform_indices = @transform_2, window_bounds = array<i64: 32, 16>}, {pipeline_mode = #tpu.pipeline_mode<synchronous>, transform_indices = @transform_3, window_bounds = array<i64: 96, 32>}, {pipeline_mode = #tpu.pipeline_mode<synchronous>, transform_indices = @transform_4, window_bounds = array<i64: 1, 32>}, {transform_indices = @transform_5, window_bounds = array<i64: 32, 128>}]} {
    %c0 = arith.constant 0 : index
    %c0_0 = arith.constant 0 : index
    %0 = vector.load %arg1[%c0, %c0_0] : memref<32x96xbf16, #tpu.memory_space<vmem>>, vector<32x96xbf16>
    %c0_1 = arith.constant 0 : index
    %c0_2 = arith.constant 0 : index
    %1 = vector.load %arg4[%c0_1, %c0_2] : memref<96x32xbf16, #tpu.memory_space<vmem>>, vector<96x32xbf16>
    %cst = arith.constant dense<0.000000e+00> : vector<32x32xf32>
    %2 = tpu.matmul %0, %1, %cst {dimension_numbers = #tpu.dot_dimension_numbers<[1], [0], [0], [1], [0, 0, 1, 1], [], []>} : vector<32x96xbf16>, vector<96x32xbf16>, vector<32x32xf32> -> vector<32x32xf32>
    %c0_3 = arith.constant 0 : index
    %c0_4 = arith.constant 0 : index
    %3 = vector.load %arg5[%c0_3, %c0_4] : memref<1x32xf32, #tpu.memory_space<vmem>>, vector<1x32xf32>
    %4 = vector.broadcast %3 : vector<1x32xf32> to vector<32x32xf32>
    %5 = arith.addf %2, %4 : vector<32x32xf32>
    %6 = arith.truncf %5 : vector<32x32xf32> to vector<32x32xbf16>
    %cst_5 = arith.constant dense<0.000000e+00> : vector<32x32xf32>
    %7 = tpu.matmul %6, %6, %cst_5 {dimension_numbers = #tpu.dot_dimension_numbers<[1], [1], [0], [0], [0, 0, 1, 0], [], []>} : vector<32x32xbf16>, vector<32x32xbf16>, vector<32x32xf32> -> vector<32x32xf32>
    %8 = tpu.iota {dimensions = array<i32: 0>} : vector<32x32xi32>
    %9 = tpu.iota {dimensions = array<i32: 1>} : vector<32x32xi32>
    %10 = arith.cmpi eq, %8, %9 : vector<32x32xi32>
    %cst_6 = arith.constant 1.000000e+05 : f32
    %11 = vector.broadcast %cst_6 : f32 to vector<32x32xf32>
    %12 = arith.subf %7, %11 : vector<32x32xf32>
    %13 = arith.select %10, %12, %7 : vector<32x32xi1>, vector<32x32xf32>
    %14 = arith.sitofp %8 : vector<32x32xi32> to vector<32x32xf32>
    %cst_7 = arith.constant 8.000000e+00 : f32
    %15 = vector.broadcast %cst_7 : f32 to vector<32x32xf32>
    %16 = arith.divf %14, %15 : vector<32x32xf32>
    %17 = math.floor %16 : vector<32x32xf32>
    %18 = arith.sitofp %9 : vector<32x32xi32> to vector<32x32xf32>
    %cst_8 = arith.constant 8.000000e+00 : f32
    %19 = vector.broadcast %cst_8 : f32 to vector<32x32xf32>
    %20 = arith.divf %18, %19 : vector<32x32xf32>
    %21 = math.floor %20 : vector<32x32xf32>
    %22 = arith.cmpf oeq, %17, %21 : vector<32x32xf32>
    %cst_9 = arith.constant -1.000000e+30 : f32
    %23 = vector.broadcast %cst_9 : f32 to vector<32x32xf32>
    %24 = arith.select %22, %13, %23 : vector<32x32xi1>, vector<32x32xf32>
    %cst_10 = arith.constant dense<0xFF800000> : vector<32xf32>
    %25 = vector.multi_reduction <maximumf>, %24, %cst_10 [1] : vector<32x32xf32> to vector<32xf32>
    %26 = vector.shape_cast %25 : vector<32xf32> to vector<32x1xf32>
    %27 = vector.broadcast %26 : vector<32x1xf32> to vector<32x32xf32>
    %28 = arith.subf %24, %27 : vector<32x32xf32>
    %29 = math.exp %28 : vector<32x32xf32>
    %cst_11 = arith.constant dense<0.000000e+00> : vector<32xf32>
    %30 = vector.multi_reduction <add>, %29, %cst_11 [1] : vector<32x32xf32> to vector<32xf32>
    %31 = vector.shape_cast %30 : vector<32xf32> to vector<32x1xf32>
    %32 = vector.broadcast %31 : vector<32x1xf32> to vector<32x32xf32>
    %33 = arith.divf %29, %32 : vector<32x32xf32>
    %34 = arith.truncf %33 : vector<32x32xf32> to vector<32x32xbf16>
    %c0_12 = arith.constant 0 : index
    %c0_13 = arith.constant 0 : index
    %c0_14 = arith.constant 0 : index
    %35 = vector.load %arg2[%c0_12, %c0_13, %c0_14] : memref<4x8x16xf32, #tpu.memory_space<vmem>>, vector<4x8x16xf32>
    %cst_15 = arith.constant dense<0.000000e+00> : vector<4x8xf32>
    %36 = vector.multi_reduction <add>, %35, %cst_15 [2] : vector<4x8x16xf32> to vector<4x8xf32>
    %37 = vector.shape_cast %36 : vector<4x8xf32> to vector<4x8x1xf32>
    %cst_16 = arith.constant 5.000000e-01 : f32
    %38 = vector.broadcast %cst_16 : f32 to vector<4x8x1xf32>
    %39 = arith.cmpf ogt, %37, %38 : vector<4x8x1xf32>
    %40 = arith.extui %39 : vector<4x8x1xi1> to vector<4x8x1xi32>
    %41 = arith.sitofp %40 : vector<4x8x1xi32> to vector<4x8x1xf32>
    %cst_17 = arith.constant dense<0.000000e+00> : vector<4x1xf32>
    %42 = vector.multi_reduction <add>, %41, %cst_17 [1] : vector<4x8x1xf32> to vector<4x1xf32>
    %43 = vector.shape_cast %42 : vector<4x1xf32> to vector<4x1x1xf32>
    %cst_18 = arith.constant 1.000000e+00 : f32
    %44 = vector.broadcast %cst_18 : f32 to vector<4x1x1xf32>
    %45 = arith.maximumf %43, %44 : vector<4x1x1xf32>
    %cst_19 = arith.constant dense<0.000000e+00> : vector<4x16xf32>
    %46 = vector.multi_reduction <add>, %35, %cst_19 [1] : vector<4x8x16xf32> to vector<4x16xf32>
    %47 = vector.shape_cast %46 : vector<4x16xf32> to vector<4x1x16xf32>
    %48 = vector.broadcast %45 : vector<4x1x1xf32> to vector<4x1x16xf32>
    %49 = arith.divf %47, %48 : vector<4x1x16xf32>
    %50 = vector.broadcast %49 : vector<4x1x16xf32> to vector<4x8x16xf32>
    %51 = arith.subf %35, %50 : vector<4x8x16xf32>
    %52 = vector.broadcast %41 : vector<4x8x1xf32> to vector<4x8x16xf32>
    %53 = arith.mulf %51, %52 : vector<4x8x16xf32>
    %54 = vector.shape_cast %53 : vector<4x8x16xf32> to vector<32x16xf32>
    %cst_20 = arith.constant 0.000000e+00 : f32
    %55 = vector.broadcast %cst_20 : f32 to vector<32x128xf32>
    %c0_21 = arith.constant 0 : index
    %c0_22 = arith.constant 0 : index
    %56 = vector.load %arg7[%c0_21, %c0_22] : memref<32x128xf32, #tpu.memory_space<vmem>>, vector<32x128xf32>
    tpu.vector_store %arg7[%c0_21, %c0_22], %55 {strides = array<i32>} : memref<32x128xf32, #tpu.memory_space<vmem>>, vector<32x128xf32>,
    %c0_23 = arith.constant 0 : index
    %c0_24 = arith.constant 0 : index
    %57 = vector.load %arg3[%c0_23, %c0_24] : memref<32x16xf32, #tpu.memory_space<vmem>>, vector<32x16xf32>
    %c0_25 = arith.constant 0 : index
    %c0_26 = arith.constant 0 : index
    %58 = vector.load %arg7[%c0_25, %c0_26] : memref<32x128xf32, #tpu.memory_space<vmem>>, vector<32x16xf32>
    tpu.vector_store %arg7[%c0_25, %c0_26], %57 {strides = array<i32>} : memref<32x128xf32, #tpu.memory_space<vmem>>, vector<32x16xf32>,
    %c0_27 = arith.constant 0 : index
    %c0_28 = arith.constant 0 : index
    %59 = vector.load %arg7[%c0_27, %c0_28] : memref<32x128xf32, #tpu.memory_space<vmem>>, vector<32x128xf32>
    %c0_29 = arith.constant 0 : index
    %c0_30 = arith.constant 0 : index
    %60 = vector.load %arg7[%c0_29, %c0_30] : memref<32x128xf32, #tpu.memory_space<vmem>>, vector<32x16xf32>
    tpu.vector_store %arg7[%c0_29, %c0_30], %54 {strides = array<i32>} : memref<32x128xf32, #tpu.memory_space<vmem>>, vector<32x16xf32>,
    %c0_31 = arith.constant 0 : index
    %c0_32 = arith.constant 0 : index
    %61 = vector.load %arg7[%c0_31, %c0_32] : memref<32x128xf32, #tpu.memory_space<vmem>>, vector<32x128xf32>
    %62 = arith.truncf %61 : vector<32x128xf32> to vector<32x128xbf16>
    %cst_33 = arith.constant dense<0.000000e+00> : vector<32x128xf32>
    %63 = tpu.matmul %34, %62, %cst_33 {dimension_numbers = #tpu.dot_dimension_numbers<[0], [0], [1], [1], [0, 1, 1, 1], [], []>} : vector<32x32xbf16>, vector<32x128xbf16>, vector<32x128xf32> -> vector<32x128xf32>
    %64 = arith.addf %63, %61 : vector<32x128xf32>
    %65 = arith.truncf %64 : vector<32x128xf32> to vector<32x128xbf16>
    %cst_34 = arith.constant dense<0.000000e+00> : vector<32x128xf32>
    %66 = tpu.matmul %34, %65, %cst_34 {dimension_numbers = #tpu.dot_dimension_numbers<[0], [0], [1], [1], [0, 1, 1, 1], [], []>} : vector<32x32xbf16>, vector<32x128xbf16>, vector<32x128xf32> -> vector<32x128xf32>
    %67 = arith.addf %66, %61 : vector<32x128xf32>
    %68 = arith.addf %67, %59 : vector<32x128xf32>
    %69 = arith.truncf %68 : vector<32x128xf32> to vector<32x128xbf16>
    %cst_35 = arith.constant dense<0.000000e+00> : vector<32x128xf32>
    %70 = tpu.matmul %34, %69, %cst_35 {dimension_numbers = #tpu.dot_dimension_numbers<[0], [0], [1], [1], [0, 1, 1, 1], [], []>} : vector<32x32xbf16>, vector<32x128xbf16>, vector<32x128xf32> -> vector<32x128xf32>
    %71 = arith.addf %70, %61 : vector<32x128xf32>
    %72 = arith.truncf %71 : vector<32x128xf32> to vector<32x128xbf16>
    %cst_36 = arith.constant dense<0.000000e+00> : vector<32x128xf32>
    %73 = tpu.matmul %34, %72, %cst_36 {dimension_numbers = #tpu.dot_dimension_numbers<[0], [0], [1], [1], [0, 1, 1, 1], [], []>} : vector<32x32xbf16>, vector<32x128xbf16>, vector<32x128xf32> -> vector<32x128xf32>
    %74 = arith.addf %73, %61 : vector<32x128xf32>
    %75 = arith.truncf %74 : vector<32x128xf32> to vector<32x128xbf16>
    %cst_37 = arith.constant dense<0.000000e+00> : vector<32x128xf32>
    %76 = tpu.matmul %34, %75, %cst_37 {dimension_numbers = #tpu.dot_dimension_numbers<[0], [0], [1], [1], [0, 1, 1, 1], [], []>} : vector<32x32xbf16>, vector<32x128xbf16>, vector<32x128xf32> -> vector<32x128xf32>
    %77 = arith.addf %76, %61 : vector<32x128xf32>
    %c0_38 = arith.constant 0 : index
    %c0_39 = arith.constant 0 : index
    %78 = vector.load %arg6[%c0_38, %c0_39] : memref<32x128xf32, #tpu.memory_space<vmem>>, vector<32x128xf32>
    tpu.vector_store %arg6[%c0_38, %c0_39], %77 {strides = array<i32>} : memref<32x128xf32, #tpu.memory_space<vmem>>, vector<32x128xf32>,
    return
  }
  func.func @transform_0(%arg0: i32) -> (i32, i32) {
    %c0_i32 = arith.constant 0 : i32
    %c0_i32_0 = arith.constant 0 : i32
    return %arg0, %c0_i32 : i32, i32
  }
  func.func @transform_1(%arg0: i32) -> (i32, i32, i32) {
    %c0_i32 = arith.constant 0 : i32
    %c0_i32_0 = arith.constant 0 : i32
    %c0_i32_1 = arith.constant 0 : i32
    return %arg0, %c0_i32, %c0_i32_0 : i32, i32, i32
  }
  func.func @transform_2(%arg0: i32) -> (i32, i32) {
    %c0_i32 = arith.constant 0 : i32
    %c0_i32_0 = arith.constant 0 : i32
    return %arg0, %c0_i32 : i32, i32
  }
  func.func @transform_3(%arg0: i32) -> (i32, i32) {
    %c0_i32 = arith.constant 0 : i32
    %c0_i32_0 = arith.constant 0 : i32
    %c0_i32_1 = arith.constant 0 : i32
    return %c0_i32, %c0_i32_0 : i32, i32
  }
  func.func @transform_4(%arg0: i32) -> (i32, i32) {
    %c0_i32 = arith.constant 0 : i32
    %c0_i32_0 = arith.constant 0 : i32
    %c0_i32_1 = arith.constant 0 : i32
    return %c0_i32, %c0_i32_0 : i32, i32
  }
  func.func @transform_5(%arg0: i32) -> (i32, i32) {
    %c0_i32 = arith.constant 0 : i32
    %c0_i32_0 = arith.constant 0 : i32
    return %arg0, %c0_i32 : i32, i32
  }
}

</mosaic_0001>

<bundles_post_ra>
// kernel: _poisson_call.1
= control target key start
LH: loop header
LB: loop body
LE: loop exit
PB: predicated region body
PF: predicated region fallthrough
CT: control target
= control target key end

     0   :  { %s999_s0 = inlined_call_operand.vmem [shape: bf16[32,96], index: 0, kind: input, shape index: {}]   ;;  %s1000_s1 = inlined_call_operand.vmem [shape: f32[4,8,16], index: 1, kind: input, shape index: {}]   ;;  %s1001_s2 = inlined_call_operand.vmem [shape: f32[32,16], index: 2, kind: input, shape index: {}]   ;;  %s1002_s3 = inlined_call_operand.vmem [shape: bf16[96,32], index: 3, kind: input, shape index: {}]   ;;  %s1003_s4 = inlined_call_operand.vmem [shape: f32[1,32], index: 4, kind: input, shape index: {}]   ;;  %s1004_s5 = inlined_call_operand.hbm [shape: f32[32,128], index: 5, kind: output, shape index: {}]  }
   0x1   :  { %v676_v0 = vld [vmem:[%s1002_s3 + $0x28] sm:$0xff]  ;;  %v675_v1 = vld [vmem:[%s1002_s3 + $0x20] sm:$0xff] }
   0x2   :  { %97 = vmatpush.bf16.msra.mxu0 %v676_v0 }
   0x3   :  { %10 = vsyncpa [#allocation4], 0  ;;  %v674_v2 = vld [vmem:[%s1002_s3 + $0x18] sm:$0xff]  ;;  %v673_v3 = vld [vmem:[%s1002_s3 + $0x10] sm:$0xff]  ;;  %vm88_vm0 = vcmask 785408   ;;  %vm116_vm1 = vcmask 261120   ;;  %v142_v24 = vlaneseq }
   0x4   :  { %v672_v4 = vld [vmem:[%s1002_s3 + $0x8] sm:$0xff]  ;;  %v671_v5 = vld [vmem:[%s1002_s3] sm:$0xff]  ;;  %v738_v21 = vmov 8.0   ;;  %v807_v28 = vld [vmem:[%s1000_s1 + $0x10] sm:$0xff]  ;;  %vm293_vm2 = vcmask 130048   ;;  %s603_s26 = sshll.u32 %s1004_s5, 4  ;;  %s604_s26 = int_to_ptr.hbm [resolvable:$true] %s603_s26 }
   0x5   :  { %v669_v6 = vld [vmem:[%s999_s0] sm:$0xff]  ;;  %v670_v7 = vld [vmem:[%s999_s0 + $0x8] sm:$0xff]  ;;  %686 = vrcp.f32 %v738_v21  ;;  %v143_v26 = vshrl.u32 %v142_v24, 7  ;;  %v811_v29 = vsel %vm293_vm2, %v807_v28, 0.0  ;;  %v148_v31 = vand.u32 127, %v142_v24  ;;  %v817_v33 = vld [vmem:[%s1000_s1 + $0x18] sm:$0xff] }
   0x6   :  { %98 = vmatpush.bf16.msra.mxu0 %v675_v1  ;;  %v685_v11 = vld [vmem:[%s1003_s4] ss:$0 sm:$0xff]  ;;  %301 = vadd.xlane.f32.xlu2 %v811_v29  ;;  %v821_v38 = vsel %vm293_vm2, %v817_v33, 0.0  ;;  %v445_v21 = vld [vmem:[%s1001_s2 + $0x18] sm:$0xff]  ;;  %s741_s27 = smov 128   ;;  %s742_s28 = smov 8  }
   0x7   :  { %v145_v30 = vadd.s32 16, %v143_v26  ;;  %v180_v35 = vcvt.s32.f32 %v148_v31  ;;  %v161_v36 = vcvt.s32.f32 %v143_v26  ;;  %v144_v42 = vadd.s32 8, %v143_v26 }
   0x8   :  { %v146_v43 = vadd.s32 24, %v143_v26  ;;  %vm149_vm6 = vcmp.eq.s32.totalorder %v143_v26, %v148_v31 }
   0x9   :  { %v163_v34 = vcvt.s32.f32 %v145_v30  ;;  %v162_v48 = vcvt.s32.f32 %v144_v42  ;;  %vm151_vm4 = vcmp.eq.s32.totalorder %v145_v30, %v148_v31  ;;  %vm150_vm8 = vcmp.eq.s32.totalorder %v144_v42, %v148_v31 }
   0xa   :  { %99 = vmatpush.bf16.msra.mxu0 %v674_v2  ;;  %v164_v47 = vcvt.s32.f32 %v146_v43  ;;  %vm152_vm9 = vcmp.eq.s32.totalorder %v146_v43, %v148_v31  ;;  %v364_v43 = vrot.slane %v821_v38, 4 }
   0xb   :  { %v687_v22 = vpop.eup %686 }
   0xc   :  { %v166_v23 = vmul.f32 8.0, %v687_v22  ;;  %vm170_vm3 = vweird.f32 %v687_v22 }
   0xe   :  { %100 = vmatpush.bf16.msra.mxu0 %v673_v3  ;;  %v167_v25 = vsub.f32 1.0, %v166_v23  ;;  %304 = vadd.xlane.f32.xlu2 %v821_v38 }
  0x10   :  { %v168_v27 = vmul.f32 %v687_v22, %v167_v25 }
  0x12   :  { %101 = vmatpush.bf16.msra.mxu0 %v672_v4  ;;  %v169_v32 = vadd.f32 %v687_v22, %v168_v27 }
  0x14   :  { %v171_v37 = vsel %vm170_vm3, %v687_v22, %v169_v32 }
  0x15   :  { %v174_v39 = vmul.f32 %v171_v37, %v163_v34  ;;  %v181_v40 = vmul.f32 %v180_v35, %v171_v37  ;;  %v172_v41 = vmul.f32 %v171_v37, %v161_v36  ;;  %v175_v53 = vmul.f32 %v171_v37, %v164_v47 }
  0x16   :  { %102 = vmatpush.bf16.msra.mxu0 %v671_v5  ;;  %v173_v54 = vmul.f32 %v171_v37, %v162_v48 }
  0x17   :  { %v178_v44 = vfloor.f32 %v174_v39  ;;  %v182_v45 = vfloor.f32 %v181_v40  ;;  %v176_v46 = vfloor.f32 %v172_v41  ;;  %v179_v61 = vfloor.f32 %v175_v53 }
  0x18   :  { %v177_v62 = vfloor.f32 %v173_v54 }
  0x19   :  { %647 = vmatmul.msk.bf16.vlgmr.msra.gmra.mxu0 %vm88_vm0, %v669_v6  ;;  %vm185_vm5 = vcmp.eq.f32.partialorder %v178_v44, %v182_v45  ;;  %vm183_vm7 = vcmp.eq.f32.partialorder %v176_v46, %v182_v45  ;;  %vm186_vm10 = vcmp.eq.f32.partialorder %v179_v61, %v182_v45  ;;  %v443_v44 = vld [vmem:[%s1001_s2 + $0x8] sm:$0xff] }
  0x1a   :  { %vm184_vm11 = vcmp.eq.f32.partialorder %v177_v62, %v182_v45 }
  0x29   :  { %648 = vmatmul.msk.bf16.gmra.mxu0 %vm88_vm0, %v670_v7 }
  0x96   :  { %v104_v8 = vpop.f32.mrf.mxu0 }
  0x97   :  { %v105_v18 = vadd.f32 %v685_v11, %v104_v8 }
  0x9e   :  { %v106_v9 = vpop.f32.mrf.mxu0 }
  0x9f   :  { %v107_v16 = vadd.f32 %v685_v11, %v106_v9  ;;  %v831_v9 = vld [vmem:[%s1000_s1 + $0x8] sm:$0xff] }
  0xa1   :  { %v114_v19 = vpack.c.bf16 %v107_v16, %v105_v18 }
  0xa3   :  { %v118_v20 = vsel %vm116_vm1, %v114_v19, 0 }
  0xa6   :  { %v109_v10 = vpop.f32.mrf.mxu0 }
  0xa7   :  { %v110_v13 = vadd.f32 %v685_v11, %v109_v10  ;;  %v836_v10 = vld [vmem:[%s1000_s1] sm:$0xff] }
  0xae   :  { %v111_v12 = vpop.f32.mrf.mxu0 }
  0xaf   :  { %v112_v14 = vadd.f32 %v685_v11, %v111_v12  ;;  %v840_v11 = vsel %vm293_vm2, %v831_v9, 0.0  ;;  %v844_v12 = vsel %vm293_vm2, %v836_v10, 0.0 }
  0xb1   :  { %v115_v15 = vpack.c.bf16 %v112_v14, %v110_v13  ;;  %v444_v13 = vld [vmem:[%s1001_s2 + $0x10] sm:$0xff]  ;;  %v302_v14 = vpop.xlane.xlu2 %301 }
  0xb2   :  { %vm308_vm12 = vcmp.gt.f32.partialorder %v302_v14, 0.5 }
  0xb3   :  { %v121_v17 = vsel %vm116_vm1, %v115_v15, 0 }
  0xb4   :  { %129 = vmatpush.bf16.xpose.msrb.mxu0 %v121_v17  ;;  %677 = vmatpush.bf16.xpose.msra.mxu1 %v121_v17 }
  0xb9   :  { %v305_v22 = vpop.xlane.xlu2 %304 }
  0xba   :  { %vm309_vm13 = vcmp.gt.f32.partialorder %v305_v22, 0.5 }
  0xbc   :  { %130 = vmatpush.bf16.xpose.msrb.mxu0 %v118_v20  ;;  %678 = vmatpush.bf16.xpose.msra.mxu1 %v118_v20  ;;  %v358_v20 = vrot.slane %v811_v29, 4 }
  0xbe   :  { %v359_v34 = vadd.f32 %v358_v20, %v811_v29 }
  0xc0   :  { %v360_v42 = vrot.slane %v359_v34, 2 }
  0xc3   :  { %649 = vmatmul.msk.bf16.vlgmr.msrb.gmra.mxu0 %vm116_vm1, %v114_v19  ;;  %650 = vmatmul.msk.bf16.vlgmr.msra.gmra.mxu1 %vm116_vm1, %v115_v15  ;;  %v739_v15 = vmov 0.0  }
  0xc4   :  { %440 = vst [vmem:[#allocation2 + $0x10] sm:$0xff] %v739_v15  ;;  %v854_v16 = vsel %vm308_vm12, 1.0, %v739_v15  ;;  %v867_v26 = vsel %vm309_vm13, 1.0, %v739_v15 }
  0xc5   :  { %448 = vst.msk [vmem:[#allocation2 + $0x10] sm:$0xff] %vm293_vm2, %v444_v13  ;;  %v330_v17 = vrot.slane %v854_v16, 4  ;;  %v336_v32 = vrot.slane %v867_v26, 4 }
  0xc6   :  { %438 = vst [vmem:[#allocation2] sm:$0xff] %v739_v15 }
  0xc7   :  { %439 = vst [vmem:[#allocation2 + $0x8] sm:$0xff] %v739_v15  ;;  %v331_v18 = vadd.f32 %v854_v16, %v330_v17  ;;  %v337_v39 = vadd.f32 %v867_v26, %v336_v32 }
  0xc8   :  { %441 = vst [vmem:[#allocation2 + $0x18] sm:$0xff] %v739_v15 }
  0xc9   :  { %v332_v19 = vrot.slane %v331_v18, 2  ;;  %449 = vst.msk [vmem:[#allocation2 + $0x18] sm:$0xff] %vm293_vm2, %v445_v21  ;;  %v338_v41 = vrot.slane %v337_v39, 2 }
  0xca   :  { %447 = vst.msk [vmem:[#allocation2 + $0x8] sm:$0xff] %vm293_vm2, %v443_v44 }
  0xcb   :  { %v333_v23 = vadd.f32 %v332_v19, %v331_v18  ;;  %v339_v29 = vadd.f32 %v338_v41, %v337_v39 }
  0xcd   :  { %v334_v31 = vrot.slane %v333_v23, 1 }
  0xcf   :  { %v335_v37 = vadd.f32 %v334_v31, %v333_v23  ;;  %v352_v23 = vrot.slane %v840_v11, 4 }
  0xd1   :  { %v344_v40 = vmax.f32 %v335_v37, 1.0 }
  0xd3   :  { %vm405_vm14 = vweird.f32 %v344_v40 }
 0x140   :  { %v132_v49 = vpop.f32.mrf.mxu0  ;;  %v137_v50 = vpop.f32.mrf.mxu1 }
 0x141   :  { %v651_v51 = vadd.f32 -100000.0, %v132_v49  ;;  %v653_v52 = vadd.f32 -100000.0, %v137_v50 }
 0x143   :  { %v159_v55 = vsel %vm151_vm4, %v653_v52, %v137_v50  ;;  %v157_v56 = vsel %vm149_vm6, %v651_v51, %v132_v49  ;;  %v340_v49 = vrot.slane %v339_v29, 1  ;;  %v361_v51 = vadd.f32 %v360_v42, %v359_v34 }
 0x144   :  { %v189_v57 = vsel %vm185_vm5, %v159_v55, -1e+30  ;;  %v187_v58 = vsel %vm183_vm7, %v157_v56, -1e+30  ;;  %v365_v52 = vadd.f32 %v364_v43, %v821_v38  ;;  %v914_v43 = vld [vmem:[#allocation2 + $0x10] sm:$0xff] }
 0x145   :  { %v197_v59 = vsel %vm116_vm1, %v189_v57, -inf  ;;  %v191_v60 = vsel %vm116_vm1, %v187_v58, -inf  ;;  %v362_v62 = vrot.slane %v361_v51, 1 }
 0x146   :  { %198 = vmax.xlane.f32.xlu1 %v197_v59  ;;  %192 = vmax.xlane.f32.xlu0 %v191_v60  ;;  %v366_v38 = vrot.slane %v365_v52, 2 }
 0x147   :  { %v363_v17 = vadd.f32 %v362_v62, %v361_v51 }
 0x148   :  { %v134_v63 = vpop.f32.mrf.mxu0  ;;  %v139_v0 = vpop.f32.mrf.mxu1 }
 0x149   :  { %v652_v1 = vadd.f32 -100000.0, %v134_v63  ;;  %v654_v2 = vadd.f32 -100000.0, %v139_v0 }
 0x14b   :  { %v158_v3 = vsel %vm150_vm8, %v652_v1, %v134_v63  ;;  %v160_v4 = vsel %vm152_vm9, %v654_v2, %v139_v0  ;;  %v411_v63 = vand.u32 2147483648, %v344_v40  ;;  %v409_v1 = vand.u32 2147483647, %v344_v40 }
 0x14c   :  { %v190_v5 = vsel %vm186_vm10, %v160_v4, -1e+30  ;;  %v188_v6 = vsel %vm184_vm11, %v158_v3, -1e+30 }
 0x14d   :  { %v200_v7 = vsel %vm116_vm1, %v190_v5, -inf  ;;  %v194_v8 = vsel %vm116_vm1, %v188_v6, -inf  ;;  %vm410_vm4 = vcmp.eq.f32.partialorder %v409_v1, 8.507059e+37 }
 0x14e   :  { %201 = vmax.xlane.f32.xlu1 %v200_v7  ;;  %195 = vmax.xlane.f32.xlu0 %v194_v8  ;;  %v412_v8 = vor.u32 1.1754944e-38, %v411_v63 }
 0x156   :  { %298 = vadd.xlane.f32.xlu1 %v840_v11  ;;  %295 = vadd.xlane.f32.xlu0 %v844_v12 }
 0x1b9   :  { %v199_v24 = vpop.xlane.xlu1 %198  ;;  %v193_v25 = vpop.xlane.xlu0 %192 }
 0x1ba   :  { %v205_v27 = vsub.f32 %v189_v57, %v199_v24  ;;  %v203_v30 = vsub.f32 %v187_v58, %v193_v25  ;;  %v341_v57 = vadd.f32 %v340_v49, %v339_v29 }
 0x1bc   :  { %v211_v35 = vmul.f32 1.442695, %v205_v27  ;;  %v207_v36 = vmul.f32 1.442695, %v203_v30  ;;  %v345_v61 = vmax.f32 %v341_v57, 1.0 }
 0x1be   :  { %688 = vpow2.f32 %v211_v35  ;;  %vm420_vm5 = vweird.f32 %v345_v61  ;;  %v424_v34 = vand.u32 2147483647, %v345_v61  ;;  %v426_v35 = vand.u32 2147483648, %v345_v61 }
 0x1bf   :  { %690 = vpow2.f32 %v207_v36  ;;  %v442_v36 = vld [vmem:[%s1001_s2] sm:$0xff]  ;;  %s740_s2 = smov [#allocation3]  }
 0x1c0   :  { %692 = vrcp.f32 %v344_v40  ;;  %446 = vst.msk [vmem:[#allocation2] sm:$0xff] %vm293_vm2, %v442_v36  ;;  %v427_v49 = vor.u32 1.1754944e-38, %v426_v35  ;;  %vm425_vm9 = vcmp.eq.f32.partialorder %v424_v34, 8.507059e+37  ;;  %v930_v34 = vld [vmem:[#allocation2 + $0x8] sm:$0xff]  ;;  %s601_s23 = sshll.u32 %s740_s2, 4  ;;  %s602_s23 = int_to_ptr.vmem [resolvable:$true] %s601_s23 }
 0x1c1   :  { %v202_v45 = vpop.xlane.xlu1 %201  ;;  %v196_v46 = vpop.xlane.xlu0 %195 }
 0x1c2   :  { %v206_v47 = vsub.f32 %v190_v5, %v202_v45  ;;  %v204_v48 = vsub.f32 %v188_v6, %v196_v46  ;;  %v367_v6 = vadd.f32 %v366_v38, %v365_v52 }
 0x1c4   :  { %v877_v50 = vpop.eup %688  ;;  %v213_v53 = vmul.f32 1.442695, %v206_v47  ;;  %v209_v54 = vmul.f32 1.442695, %v204_v48  ;;  %v368_v25 = vrot.slane %v367_v6, 1  ;;  %v353_v47 = vadd.f32 %v352_v23, %v840_v11 }
 0x1c5   :  { %v880_v55 = vpop.eup %690  ;;  %v221_v56 = vsel %vm116_vm1, %v877_v50, 0.0 }
 0x1c6   :  { %v693_v58 = vpop.eup %692  ;;  %694 = vpow2.f32 %v213_v53  ;;  %222 = vadd.xlane.f32.xlu1 %v221_v56  ;;  %v215_v59 = vsel %vm116_vm1, %v880_v55, 0.0  ;;  %v369_v29 = vadd.f32 %v368_v25, %v367_v6  ;;  %v354_v57 = vrot.slane %v353_v47, 2 }
 0x1c7   :  { %696 = vpow2.f32 %v209_v54  ;;  %216 = vadd.xlane.f32.xlu2 %v215_v59  ;;  %v401_v60 = vmul.f32 %v693_v58, %v344_v40  ;;  %vm406_vm15 = vweird.f32 %v693_v58 }
 0x1c8   :  { %698 = vrcp.f32 %v345_v61  ;;  %vm891_vm3 = vmor %vm405_vm14, %vm406_vm15  ;;  %v355_v62 = vadd.f32 %v354_v57, %v353_v47 }
 0x1c9   :  { %v402_v0 = vsub.f32 1.0, %v401_v60  ;;  %v299_v2 = vpop.xlane.xlu1 %298  ;;  %v296_v37 = vpop.xlane.xlu0 %295  ;;  %v924_v60 = vld [vmem:[#allocation2 + $0x18] sm:$0xff] }
 0x1ca   :  { %vm307_vm0 = vcmp.gt.f32.partialorder %v299_v2, 0.5  ;;  %vm306_vm7 = vcmp.gt.f32.partialorder %v296_v37, 0.5  ;;  %v356_v6 = vrot.slane %v355_v62, 1 }
 0x1cb   :  { %v403_v3 = vmul.f32 %v693_v58, %v402_v0  ;;  %v887_v4 = vsel %vm307_vm0, 1.0, %v739_v15  ;;  %v912_v42 = vsel %vm306_vm7, 1.0, %v739_v15 }
 0x1cc   :  { %v889_v5 = vpop.eup %694  ;;  %v324_v13 = vrot.slane %v887_v4, 4  ;;  %v318_v46 = vrot.slane %v912_v42, 4 }
 0x1cd   :  { %v896_v14 = vpop.eup %696  ;;  %v224_v18 = vsel %vm116_vm1, %v889_v5, 0.0  ;;  %v404_v19 = vadd.f32 %v693_v58, %v403_v3 }
 0x1ce   :  { %v218_v20 = vsel %vm116_vm1, %v896_v14, 0.0  ;;  %v325_v21 = vadd.f32 %v887_v4, %v324_v13  ;;  %v699_v22 = vpop.eup %698  ;;  %v319_v15 = vadd.f32 %v912_v42, %v318_v46 }
 0x1cf   :  { %225 = vadd.xlane.f32.xlu2 %v224_v18  ;;  %219 = vadd.xlane.f32.xlu0 %v218_v20  ;;  %v408_v24 = vsel %vm891_vm3, %v693_v58, %v404_v19  ;;  %v416_v30 = vmul.f32 %v699_v22, %v345_v61  ;;  %vm421_vm6 = vweird.f32 %v699_v22  ;;  %v346_v58 = vrot.slane %v844_v12, 4 }
 0x1d0   :  { %v413_v27 = vsel %vm410_vm4, %v412_v8, %v408_v24  ;;  %v326_v31 = vrot.slane %v325_v21, 2  ;;  %vm422_vm8 = vmor %vm420_vm5, %vm421_vm6  ;;  %v320_v54 = vrot.slane %v319_v15, 2 }
 0x1d1   :  { %v414_v32 = vmul.f32 %v413_v27, %v363_v17  ;;  %v417_v39 = vsub.f32 1.0, %v416_v30  ;;  %v347_v38 = vadd.f32 %v346_v58, %v844_v12  ;;  %v357_v12 = vadd.f32 %v356_v6, %v355_v62 }
 0x1d2   :  { %v327_v40 = vadd.f32 %v326_v31, %v325_v21 }
 0x1d3   :  { %v432_v41 = vsub.f32 %v807_v28, %v414_v32  ;;  %v418_v44 = vmul.f32 %v699_v22, %v417_v39  ;;  %v348_v7 = vrot.slane %v347_v38, 2 }
 0x1d4   :  { %v328_v45 = vrot.slane %v327_v40, 1 }
 0x1d5   :  { %v436_v48 = vmul.f32 %v854_v16, %v432_v41  ;;  %v419_v51 = vadd.f32 %v699_v22, %v418_v44  ;;  %v321_v16 = vadd.f32 %v320_v54, %v319_v15  ;;  %v349_v19 = vadd.f32 %v348_v7, %v347_v38 }
 0x1d6   :  { %v329_v28 = vadd.f32 %v328_v45, %v327_v40 }
 0x1d7   :  { %456 = vst.msk [vmem:[#allocation2 + $0x10] sm:$0xff] %vm293_vm2, %v436_v48  ;;  %v423_v52 = vsel %vm422_vm8, %v699_v22, %v419_v51  ;;  %v322_v61 = vrot.slane %v321_v16, 1  ;;  %v350_v24 = vrot.slane %v349_v19, 1 }
 0x1d8   :  { %v343_v53 = vmax.f32 %v329_v28, 1.0  ;;  %v428_v56 = vsel %vm425_vm9, %v427_v49, %v423_v52 }
 0x1d9   :  { %v429_v11 = vmul.f32 %v428_v56, %v369_v29  ;;  %v323_v0 = vadd.f32 %v322_v61, %v321_v16  ;;  %v351_v39 = vadd.f32 %v350_v24, %v349_v19  ;;  %v935_v29 = vld [vmem:[#allocation2] sm:$0xff] }
 0x1da   :  { %700 = vrcp.f32 %v343_v53  ;;  %vm390_vm10 = vweird.f32 %v343_v53  ;;  %v396_v8 = vand.u32 2147483648, %v343_v53 }
 0x1db   :  { %v433_v59 = vsub.f32 %v817_v33, %v429_v11  ;;  %v342_v3 = vmax.f32 %v323_v0, 1.0  ;;  %v394_v33 = vand.u32 2147483647, %v343_v53 }
 0x1dc   :  { %v397_v18 = vor.u32 1.1754944e-38, %v396_v8 }
 0x1dd   :  { %v437_v63 = vmul.f32 %v867_v26, %v433_v59  ;;  %702 = vrcp.f32 %v342_v3  ;;  %vm395_vm13 = vcmp.eq.f32.partialorder %v394_v33, 8.507059e+37  ;;  %v381_v27 = vand.u32 2147483648, %v342_v3 }
 0x1de   :  { %vm375_vm14 = vweird.f32 %v342_v3  ;;  %v379_v31 = vand.u32 2147483647, %v342_v3  ;;  %v939_v47 = vld [vmem:[#allocation2 + $0x10] sm:$0xff] }
 0x1df   :  { %457 = vst.msk [vmem:[#allocation2 + $0x18] sm:$0xff] %vm293_vm2, %v437_v63  ;;  %v382_v37 = vor.u32 1.1754944e-38, %v381_v27 }
 0x1e0   :  { %v701_v1 = vpop.eup %700  ;;  %vm380_vm3 = vcmp.eq.f32.partialorder %v379_v31, 8.507059e+37 }
 0x1e1   :  { %v386_v2 = vmul.f32 %v701_v1, %v343_v53  ;;  %vm391_vm11 = vweird.f32 %v701_v1 }
 0x1e2   :  { %vm392_vm12 = vmor %vm390_vm10, %vm391_vm11 }
 0x1e3   :  { %v387_v13 = vsub.f32 1.0, %v386_v2  ;;  %v703_v20 = vpop.eup %702 }
 0x1e4   :  { %v371_v23 = vmul.f32 %v703_v20, %v342_v3  ;;  %vm376_vm15 = vweird.f32 %v703_v20 }
 0x1e5   :  { %v388_v17 = vmul.f32 %v701_v1, %v387_v13  ;;  %vm377_vm0 = vmor %vm375_vm14, %vm376_vm15 }
 0x1e6   :  { %v372_v30 = vsub.f32 1.0, %v371_v23 }
 0x1e7   :  { %v389_v26 = vadd.f32 %v701_v1, %v388_v17 }
 0x1e8   :  { %v373_v35 = vmul.f32 %v703_v20, %v372_v30 }
 0x1e9   :  { %v393_v21 = vsel %vm392_vm12, %v701_v1, %v389_v26 }
 0x1ea   :  { %v398_v22 = vsel %vm395_vm13, %v397_v18, %v393_v21  ;;  %v374_v40 = vadd.f32 %v703_v20, %v373_v35 }
 0x1eb   :  { %v399_v25 = vmul.f32 %v398_v22, %v357_v12 }
 0x1ec   :  { %v378_v41 = vsel %vm377_vm0, %v703_v20, %v374_v40 }
 0x1ed   :  { %v431_v32 = vsub.f32 %v831_v9, %v399_v25  ;;  %v383_v44 = vsel %vm380_vm3, %v382_v37, %v378_v41 }
 0x1ee   :  { %v384_v45 = vmul.f32 %v383_v44, %v351_v39 }
 0x1ef   :  { %v435_v36 = vmul.f32 %v887_v4, %v431_v32  ;;  %v941_v4 = vld [vmem:[#allocation2 + $0x18] sm:$0xff] }
 0x1f0   :  { %v430_v46 = vsub.f32 %v836_v10, %v384_v45  ;;  %v463_v48 = vpack.c.bf16 %v941_v4, %v939_v47 }
 0x1f1   :  { %455 = vst.msk [vmem:[#allocation2 + $0x8] sm:$0xff] %vm293_vm2, %v435_v36 }
 0x1f2   :  { %v434_v9 = vmul.f32 %v912_v42, %v430_v46  ;;  %492 = vmatpush.bf16.msra.mxu2 %v463_v48 }
 0x1f4   :  { %454 = vst.msk [vmem:[#allocation2] sm:$0xff] %vm293_vm2, %v434_v9 }
 0x1f8   :  { %v947_v51 = vld [vmem:[#allocation2 + $0x8] sm:$0xff] }
 0x1fb   :  { %v945_v49 = vld [vmem:[#allocation2] sm:$0xff] }
 0x1fc   :  { %v462_v10 = vpack.c.bf16 %v947_v51, %v945_v49 }
 0x1fe   :  { %493 = vmatpush.bf16.msra.mxu2 %v462_v10 }
 0x239   :  { %v951_v15 = vpop.xlane.xlu1 %222 }
 0x23a   :  { %v217_v28 = vpop.xlane.xlu2 %216  ;;  %v268_v32 = vand.u32 2147483648, %v951_v15  ;;  %vm262_vm15 = vweird.f32 %v951_v15  ;;  %v266_v35 = vand.u32 2147483647, %v951_v15 }
 0x23b   :  { %704 = vrcp.f32 %v217_v28  ;;  %v238_v62 = vand.u32 2147483648, %v217_v28  ;;  %vm232_vm4 = vweird.f32 %v217_v28  ;;  %v236_v0 = vand.u32 2147483647, %v217_v28 }
 0x23c   :  { %v269_v37 = vor.u32 1.1754944e-38, %v268_v32 }
 0x23d   :  { %v239_v8 = vor.u32 1.1754944e-38, %v238_v62  ;;  %vm237_vm8 = vcmp.eq.f32.partialorder %v236_v0, 8.507059e+37 }
 0x241   :  { %v705_v42 = vpop.eup %704 }
 0x242   :  { %v228_v52 = vmul.f32 %v705_v42, %v217_v28  ;;  %v226_v53 = vpop.xlane.xlu2 %225  ;;  %v220_v54 = vpop.xlane.xlu0 %219  ;;  %vm233_vm2 = vweird.f32 %v705_v42 }
 0x243   :  { %706 = vrcp.f32 %v226_v53  ;;  %v253_v2 = vand.u32 2147483648, %v220_v54  ;;  %vm234_vm5 = vmor %vm232_vm4, %vm233_vm2  ;;  %v251_v7 = vand.u32 2147483647, %v220_v54  ;;  %vm247_vm7 = vweird.f32 %v220_v54 }
 0x244   :  { %v229_v56 = vsub.f32 1.0, %v228_v52  ;;  %708 = vrcp.f32 %v220_v54  ;;  %v283_v27 = vand.u32 2147483648, %v226_v53  ;;  %vm277_vm13 = vweird.f32 %v226_v53 }
 0x245   :  { %710 = vrcp.f32 %v951_v15  ;;  %v254_v18 = vor.u32 1.1754944e-38, %v253_v2  ;;  %vm252_vm10 = vcmp.eq.f32.partialorder %v251_v7, 8.507059e+37  ;;  %v281_v31 = vand.u32 2147483647, %v226_v53 }
 0x246   :  { %v230_v57 = vmul.f32 %v705_v42, %v229_v56  ;;  %vm267_vm2 = vcmp.eq.f32.partialorder %v266_v35, 8.507059e+37 }
 0x247   :  { %vm282_vm3 = vcmp.eq.f32.partialorder %v281_v31, 8.507059e+37 }
 0x248   :  { %v231_v61 = vadd.f32 %v705_v42, %v230_v57 }
 0x249   :  { %v707_v58 = vpop.eup %706 }
 0x24a   :  { %v709_v11 = vpop.eup %708  ;;  %v273_v38 = vmul.f32 %v707_v58, %v226_v53  ;;  %v235_v6 = vsel %vm234_vm5, %v705_v42, %v231_v61  ;;  %vm278_vm11 = vweird.f32 %v707_v58 }
 0x24b   :  { %v711_v16 = vpop.eup %710  ;;  %v243_v59 = vmul.f32 %v709_v11, %v220_v54  ;;  %vm248_vm6 = vweird.f32 %v709_v11  ;;  %v240_v17 = vsel %vm237_vm8, %v239_v8, %v235_v6  ;;  %vm279_vm14 = vmor %vm277_vm13, %vm278_vm11 }
 0x24c   :  { %v258_v1 = vmul.f32 %v711_v16, %v951_v15  ;;  %v274_v13 = vsub.f32 1.0, %v273_v38  ;;  %vm249_vm9 = vmor %vm247_vm7, %vm248_vm6  ;;  %v241_v21 = vmul.f32 %v880_v55, %v240_v17  ;;  %vm263_vm12 = vweird.f32 %v711_v16 }
 0x24d   :  { %v244_v63 = vsub.f32 1.0, %v243_v59  ;;  %vm264_vm0 = vmor %vm262_vm15, %vm263_vm12 }
 0x24e   :  { %v259_v12 = vsub.f32 1.0, %v258_v1  ;;  %v275_v20 = vmul.f32 %v707_v58, %v274_v13 }
 0x24f   :  { %v245_v3 = vmul.f32 %v709_v11, %v244_v63 }
 0x250   :  { %v260_v23 = vmul.f32 %v711_v16, %v259_v12  ;;  %v276_v25 = vadd.f32 %v707_v58, %v275_v20 }
 0x251   :  { %v246_v33 = vadd.f32 %v709_v11, %v245_v3 }
 0x252   :  { %v261_v30 = vadd.f32 %v711_v16, %v260_v23  ;;  %v280_v55 = vsel %vm279_vm14, %v707_v58, %v276_v25 }
 0x253   :  { %v250_v19 = vsel %vm249_vm9, %v709_v11, %v246_v33 }
 0x254   :  { %v255_v26 = vsel %vm252_vm10, %v254_v18, %v250_v19  ;;  %v265_v36 = vsel %vm264_vm0, %v711_v16, %v261_v30 }
 0x255   :  { %v256_v22 = vmul.f32 %v896_v14, %v255_v26  ;;  %v284_v14 = vor.u32 1.1754944e-38, %v283_v27  ;;  %v270_v40 = vsel %vm267_vm2, %v269_v37, %v265_v36 }
 0x256   :  { %v271_v44 = vmul.f32 %v877_v50, %v270_v40 }
 0x257   :  { %v287_v24 = vpack.c.bf16 %v256_v22, %v241_v21  ;;  %v285_v39 = vsel %vm282_vm3, %v284_v14, %v280_v55 }
 0x258   :  { %v286_v41 = vmul.f32 %v889_v5, %v285_v39 }
 0x259   :  { %464 = vxpose.xlu0.c.b16.start [1/2] (short) (narrow) %v287_v24, 32 }
 0x25a   :  { %v288_v45 = vpack.c.bf16 %v286_v41, %v271_v44 }
 0x269   :  { %465 = vxpose.xlu0.c.b16.end [2/2] (short) (narrow) %v288_v45, 32 }
 0x305   :  { %v472_v46 = vpop.trf.xlu0 }
 0x306   :  { %659 = vmatmul.msk.bf16.vlgmr.msra.gmra.mxu2 %vm116_vm1, %v472_v46 }
 0x315   :  { %v473_v9 = vpop.trf.xlu0 }
 0x316   :  { %660 = vmatmul.msk.bf16.gmra.mxu2 %vm116_vm1, %v473_v9 }
 0x389   :  { %v495_v48 = vpop.f32.mrf.mxu2 }
 0x38a   :  { %v496_v50 = vadd.f32 %v495_v48, %v945_v49 }
 0x391   :  { %v497_v10 = vpop.f32.mrf.mxu2 }
 0x392   :  { %v498_v5 = vadd.f32 %v497_v10, %v947_v51 }
 0x394   :  { %v505_v54 = vpack.c.bf16 %v498_v5, %v496_v50 }
 0x399   :  { %v500_v28 = vpop.f32.mrf.mxu2 }
 0x39a   :  { %v501_v15 = vadd.f32 %v500_v28, %v939_v47 }
 0x3a1   :  { %v502_v42 = vpop.f32.mrf.mxu2 }
 0x3a2   :  { %v503_v52 = vadd.f32 %v502_v42, %v941_v4 }
 0x3a4   :  { %v506_v53 = vpack.c.bf16 %v503_v52, %v501_v15 }
 0x3a6   :  { %513 = vmatpush.bf16.msra.mxu3 %v506_v53 }
 0x3aa   :  { %514 = vmatpush.bf16.msra.mxu3 %v505_v54 }
 0x3ad   :  { %661 = vmatmul.msk.bf16.vlgmr.msra.gmra.mxu3 %vm116_vm1, %v472_v46 }
 0x3bd   :  { %662 = vmatmul.msk.bf16.gmra.mxu3 %vm116_vm1, %v473_v9 }
 0x430   :  { %v516_v56 = vpop.f32.mrf.mxu3 }
 0x431   :  { %v517_v62 = vadd.f32 %v516_v56, %v945_v49 }
 0x433   :  { %v526_v2 = vadd.f32 %v517_v62, %v935_v29 }
 0x438   :  { %v518_v57 = vpop.f32.mrf.mxu3 }
 0x439   :  { %v519_v59 = vadd.f32 %v518_v57, %v947_v51 }
 0x43b   :  { %v527_v0 = vadd.f32 %v519_v59, %v930_v34 }
 0x43d   :  { %v530_v3 = vpack.c.bf16 %v527_v0, %v526_v2 }
 0x440   :  { %v521_v58 = vpop.f32.mrf.mxu3 }
 0x441   :  { %v522_v11 = vadd.f32 %v521_v58, %v939_v47 }
 0x443   :  { %v528_v38 = vadd.f32 %v522_v11, %v914_v43 }
 0x448   :  { %v523_v16 = vpop.f32.mrf.mxu3 }
 0x449   :  { %v524_v61 = vadd.f32 %v523_v16, %v941_v4 }
 0x44b   :  { %v529_v63 = vadd.f32 %v524_v61, %v924_v60 }
 0x44d   :  { %v531_v1 = vpack.c.bf16 %v529_v63, %v528_v38 }
 0x44f   :  { %538 = vmatpush.bf16.msrb.mxu2 %v531_v1 }
 0x453   :  { %539 = vmatpush.bf16.msrb.mxu2 %v530_v3 }
 0x456   :  { %663 = vmatmul.msk.bf16.vlgmr.msrb.gmra.mxu2 %vm116_vm1, %v472_v46 }
 0x466   :  { %664 = vmatmul.msk.bf16.gmra.mxu2 %vm116_vm1, %v473_v9 }
 0x4d9   :  { %v541_v6 = vpop.f32.mrf.mxu2 }
 0x4da   :  { %v542_v29 = vadd.f32 %v541_v6, %v945_v49 }
 0x4e1   :  { %v543_v7 = vpop.f32.mrf.mxu2 }
 0x4e2   :  { %v544_v34 = vadd.f32 %v543_v7, %v947_v51 }
 0x4e4   :  { %v551_v17 = vpack.c.bf16 %v544_v34, %v542_v29 }
 0x4e9   :  { %v546_v8 = vpop.f32.mrf.mxu2 }
 0x4ea   :  { %v547_v43 = vadd.f32 %v546_v8, %v939_v47 }
 0x4f1   :  { %v548_v13 = vpop.f32.mrf.mxu2 }
 0x4f2   :  { %v549_v60 = vadd.f32 %v548_v13, %v941_v4 }
 0x4f4   :  { %v552_v33 = vpack.c.bf16 %v549_v60, %v547_v43 }
 0x4f6   :  { %559 = vmatpush.bf16.msrb.mxu3 %v552_v33 }
 0x4fa   :  { %560 = vmatpush.bf16.msrb.mxu3 %v551_v17 }
 0x4fd   :  { %665 = vmatmul.msk.bf16.vlgmr.msrb.gmra.mxu3 %vm116_vm1, %v472_v46 }
 0x50d   :  { %666 = vmatmul.msk.bf16.gmra.mxu3 %vm116_vm1, %v473_v9 }
 0x580   :  { %v562_v18 = vpop.f32.mrf.mxu3 }
 0x581   :  { %v563_v24 = vadd.f32 %v562_v18, %v945_v49 }
 0x588   :  { %v564_v12 = vpop.f32.mrf.mxu3 }
 0x589   :  { %v565_v22 = vadd.f32 %v564_v12, %v947_v51 }
 0x58b   :  { %v572_v25 = vpack.c.bf16 %v565_v22, %v563_v24 }
 0x590   :  { %v567_v19 = vpop.f32.mrf.mxu3 }
 0x591   :  { %v568_v20 = vadd.f32 %v567_v19, %v939_v47 }
 0x598   :  { %v569_v26 = vpop.f32.mrf.mxu3 }
 0x599   :  { %v570_v21 = vadd.f32 %v569_v26, %v941_v4 }
 0x59b   :  { %v573_v23 = vpack.c.bf16 %v570_v21, %v568_v20 }
 0x59d   :  { %580 = vmatpush.bf16.msrb.mxu1 %v573_v23 }
 0x5a1   :  { %581 = vmatpush.bf16.msrb.mxu1 %v572_v25 }
 0x5a4   :  { %667 = vmatmul.msk.bf16.vlgmr.msrb.gmra.mxu1 %vm116_vm1, %v472_v46 }
 0x5b4   :  { %668 = vmatmul.msk.bf16.gmra.mxu1 %vm116_vm1, %v473_v9 }
 0x621   :  { %v583_v27 = vpop.f32.mrf.mxu1 }
 0x622   :  { %v584_v30 = vadd.f32 %v583_v27, %v945_v49 }
 0x624   :  { %593 = vst [vmem:[#allocation3] sm:$0xff] %v584_v30 }
 0x629   :  { %v585_v31 = vpop.f32.mrf.mxu1 }
 0x62a   :  { %v586_v32 = vadd.f32 %v585_v31, %v947_v51 }
 0x62c   :  { %594 = vst [vmem:[#allocation3 + $0x8] sm:$0xff] %v586_v32 }
 0x631   :  { %v588_v35 = vpop.f32.mrf.mxu1 }
 0x632   :  { %v589_v55 = vadd.f32 %v588_v35, %v939_v47 }
 0x634   :  { %595 = vst [vmem:[#allocation3 + $0x10] sm:$0xff] %v589_v55 }
 0x639   :  { %v590_v14 = vpop.f32.mrf.mxu1 }
 0x63a   :  { %v591_v49 = vadd.f32 %v590_v14, %v941_v4 }
 0x63c   :  { %596 = vst [vmem:[#allocation3 + $0x18] sm:$0xff] %v591_v49 }
 0x63d   :  { %609 = dma.vmem_to_hbm [thread:$0]  %s602_s23, 512, %s604_s26, [#allocation4], %s741_s27, %s741_s27, %s742_s28  }
 0x63e   :  { %736 = dma.done.wait [#allocation4], 512  }
 0x63f   :  { %737 = vsyncadd [#allocation4], 4294966784 }
 0x640   :  { %614 = vsyncpa [#allocation4], 1 }

</bundles_post_ra>
